<compile_context>
chip_gen: v7x
topology: tpu7x:2x2x1
jax: 0.10.0
libtpu: 0.0.40
codegen_flags: <defaults>
</compile_context>

<pallas_src>
import functools
import math
import re

import jax
import jax.numpy as jnp
from jax.experimental import pallas as pl
from jax.experimental.pallas import tpu as pltpu


# --------------------------------------------------------------------------
# Kernel
# --------------------------------------------------------------------------
def _argmax_kernel(hm_ref, idx_ref, mx_ref, amax_ref, *, hw_total, thw, mask_tail):
    """Process one (bt, C, thw) heatmap tile.  Grid = (batch_block, hw_block).

    The HW axis is a reduction: running max (f32) and running flat argmax
    (int32) live in VMEM scratch; the (bt, C, 1) index output is written once
    on the last HW step (accumulator pattern).
    """
    k = pl.program_id(1)

    hm = hm_ref[...]                                             # (bt, C, thw), native dtype
    iota = jax.lax.broadcasted_iota(jnp.int32, hm.shape, 2)      # (bt, C, thw) i32
    if mask_tail:
        # Last HW block may extend past HW: neutralize out-of-range lanes so
        # stale/undefined buffer tails can never win the argmax.
        valid = (iota + k * thw) < hw_total
        hm = jnp.where(valid, hm, jnp.asarray(-jnp.inf, dtype=hm.dtype))

    local_mx = jnp.max(hm, axis=-1, keepdims=True)               # (bt, C, 1)
    # First-occurrence argmax inside this tile (matches torch.argmax
    # tie-breaking): min index among positions equal to the tile max.
    local_idx = jnp.min(jnp.where(hm == local_mx, iota, thw),
                        axis=-1, keepdims=True)                  # (bt, C, 1) i32
    local_mx32 = local_mx.astype(jnp.float32)

    @pl.when(k == 0)
    def _first():
        # First tile always wins: handles all--inf channels (torch.argmax -> 0).
        mx_ref[...] = local_mx32
        amax_ref[...] = local_idx

    @pl.when(k > 0)
    def _combine():
        # Strict '>' keeps the earliest tile on ties, which together with the
        # in-tile min-index preserves first-occurrence argmax.
        better = local_mx32 > mx_ref[...]
        mx_ref[...] = jnp.where(better, local_mx32, mx_ref[...])
        amax_ref[...] = jnp.where(better, local_idx + k * thw, amax_ref[...])

    @pl.when(k == pl.num_programs(1) - 1)
    def _finalize():
        idx_ref[...] = amax_ref[...]


# --------------------------------------------------------------------------
# Tiling / VMEM heuristics
# --------------------------------------------------------------------------
def _tpu_generation():
    """Best-effort TPU generation sniff (0 if unknown)."""
    try:
        kind = jax.devices()[0].device_kind
        m = re.search(r"(\d+)", kind)
        return int(m.group(1)) if m else 0
    except Exception:  # noqa: BLE001 - purely advisory
        return 0


def _sublane_multiple(itemsize):
    # f32 -> 8 sublanes, bf16 -> 16, int8/fp8 -> 32.
    return max(8, 32 // max(int(itemsize), 1))


def _choose_blocks(B, C, HW, itemsize, target_bytes, min_batch_blocks, hw_tile=None):
    """Pick (batch_block, hw_tile, mask_tail) with VMEM-padding-aware sizes."""
    lane = 128
    c_pad = -(-C // _sublane_multiple(itemsize)) * _sublane_multiple(itemsize)

    if hw_tile is not None:
        thw = -(-int(hw_tile) // lane) * lane          # force lane multiple
    else:
        hw_pad = -(-HW // lane) * lane
        # Largest lane-multiple tile whose padded (c_pad, thw) slab per batch
        # element stays under the per-step target.
        max_lanes = max(1, target_bytes // (c_pad * itemsize * lane))
        thw = min(hw_pad, max_lanes * lane)
    if thw >= HW:
        thw = HW                                       # full-extent block: always legal
    mask_tail = (HW % thw) != 0                        # last block extends past HW

    # Batch packing: amortize ~0.35us/step overhead, but keep at least
    # `min_batch_blocks` batch blocks so the parallel axis can spread across
    # TensorCores (v7x has 2 TCs sharing 3.2 TB/s HBM).
    per_b = c_pad * max(thw, lane) * itemsize          # padded heatmap slab / batch elem
    bt = max(1, min(B, target_bytes // max(per_b, 1)))
    if min_batch_blocks > 1:
        bt = min(bt, max(1, B // min_batch_blocks))
    while B % bt:                                      # keep bt | B (simple, B is small)
        bt -= 1
    return int(bt), int(thw), bool(mask_tail)


def _vmem_limit(bt, C, thw, itemsize, gen):
    """Scoped-VMEM budget from PADDED tile bytes (double-buffered) + headroom."""
    lane = 128
    c_pad_in = -(-C // _sublane_multiple(itemsize)) * _sublane_multiple(itemsize)
    c_pad32 = -(-C // 8) * 8
    thw_pad = -(-thw // lane) * lane
    in_bytes = bt * c_pad_in * thw_pad * itemsize      # one heatmap block (padded)
    out_bytes = bt * c_pad32 * lane * 4                # (bt, C, 1) i32, lane-padded
    scratch = 2 * bt * c_pad32 * lane * 4              # f32 max + i32 idx accumulators
    need = 2 * in_bytes + 2 * out_bytes + scratch + (4 << 20)
    cap = (48 << 20) if gen >= 7 else (96 << 20)       # leave headroom of 64/128 MiB phys
    return int(min(cap, max(16 << 20, need)))


# --------------------------------------------------------------------------
# Wrapper
# --------------------------------------------------------------------------
def coordinate_decoding(grid, heatmaps, flip: bool = True, hw_tile=None):
    """JAX/Pallas equivalent of CoordinateDecoding(mode='argmax', flip=flip)."""
    B, C = heatmaps.shape[0], heatmaps.shape[1]
    spatial = heatmaps.shape[2:]
    D = grid.shape[1]
    assert grid.shape[0] == B and tuple(grid.shape[2:]) == tuple(spatial)
    assert D == len(spatial)
    HW = math.prod(spatial)

    hm_flat = heatmaps.reshape(B, C, HW)               # free row-major reshape
    if not jnp.issubdtype(hm_flat.dtype, jnp.floating):
        hm_flat = hm_flat.astype(jnp.float32)
    itemsize = hm_flat.dtype.itemsize

    gen = _tpu_generation()
    # Bigger per-step slabs on 128-MiB-VMEM chips (v5e/v6e), smaller on v7x (64 MiB).
    target_bytes = (2 << 20) if gen >= 7 else ((6 << 20) if gen in (5, 6) else (4 << 20))
    min_batch_blocks = 2 if (gen >= 7 and B >= 2) else 1

    bt, thw, mask_tail = _choose_blocks(
        B, C, HW, itemsize, target_bytes, min_batch_blocks, hw_tile)
    vmem_limit = _vmem_limit(bt, C, thw, itemsize, gen)

    cost = pl.CostEstimate(
        flops=3 * B * C * HW,                          # max + eq + min passes
        transcendentals=0,
        bytes_accessed=int(B * C * HW * itemsize + B * C * 4),
    )

    kernel = functools.partial(
        _argmax_kernel, hw_total=HW, thw=thw, mask_tail=mask_tail)

    idx = pl.pallas_call(
        kernel,
        out_shape=jax.ShapeDtypeStruct((B, C, 1), jnp.int32),
        grid_spec=pltpu.PrefetchScalarGridSpec(
            num_scalar_prefetch=0,
            grid=(B // bt, pl.cdiv(HW, thw)),
            in_specs=[pl.BlockSpec((bt, C, thw), lambda b, k: (b, 0, k))],
            out_specs=pl.BlockSpec((bt, C, 1), lambda b, k: (b, 0, 0)),
            scratch_shapes=[
                pltpu.VMEM((bt, C, 1), jnp.float32),   # running max
                pltpu.VMEM((bt, C, 1), jnp.int32),     # running flat argmax
            ],
        ),
        compiler_params=pltpu.CompilerParams(
            dimension_semantics=("parallel", "arbitrary"),
            vmem_limit_bytes=vmem_limit,
        ),
        cost_estimate=cost,
    )(hm_flat)

    # Tiny (B*C*D-element) gather on the grid in the wrapper -- the grid never
    # flows through the memory-bound kernel. Clamp guards the degenerate
    # all-NaN-channel sentinel so the gather index stays in range.
    idx = jnp.minimum(idx[..., 0], HW - 1)                              # (B, C)
    g_flat = grid.reshape(B, D, HW)
    coords = jnp.take_along_axis(g_flat, idx[:, None, :], axis=2)       # (B, D, C)
    coords = jnp.swapaxes(coords, 1, 2).astype(jnp.float32)             # (B, C, D)
    # torch.flip(coords, dims=[2]) on the tiny output, never on the grid input.
    return coords[:, :, ::-1] if flip else coords


# --------------------------------------------------------------------------
# Pure-JAX reference (mirrors the PyTorch forward semantics)
# --------------------------------------------------------------------------
def _reference(grid, heatmaps, flip: bool = True):
    B, C = heatmaps.shape[0], heatmaps.shape[1]
    spatial = heatmaps.shape[2:]
    D = grid.shape[1]
    HW = math.prod(spatial)
    hm = heatmaps.reshape(B, C, HW)
    idx = jnp.argmax(hm, axis=-1)                                       # (B, C)
    gf = grid.reshape(B, D, HW)
    coords = jnp.take_along_axis(gf, idx[:, None, :], axis=2)           # (B, D, C)
    coords = jnp.swapaxes(coords, 1, 2).astype(jnp.float32)             # (B, C, D)
    return coords[:, :, ::-1] if flip else coords


if __name__ == "__main__":
    key = jax.random.PRNGKey(0)
    k1, k2, k3, k4 = jax.random.split(key, 4)

    # ---- Test 1: canonical small case (B=2, C=4, 16x16, D=2, flip=True) ----
    B, C, H, W, D = 2, 4, 16, 16, 2
    heatmaps = jax.random.normal(k1, (B, C, H, W), dtype=jnp.float32)
    ys = jnp.linspace(-1.0, 1.0, H, dtype=jnp.float32)
    xs = jnp.linspace(-1.0, 1.0, W, dtype=jnp.float32)
    yy, xx = jnp.meshgrid(ys, xs, indexing="ij")
    base = jnp.stack([yy, xx], axis=0)                                  # (D, H, W)
    offsets = jax.random.uniform(k2, (B, 1, 1, 1), dtype=jnp.float32) * 0.1
    grid = base[None, ...] + offsets                                    # (B, D, H, W)

    out = jax.block_until_ready(coordinate_decoding(grid, heatmaps, flip=True))
    ref = _reference(grid, heatmaps, flip=True)
    assert out.shape == (B, C, D), out.shape
    assert jnp.allclose(out, ref, atol=1e-6), (out, ref)

    # ---- Test 2: non-128-divisible HW, multi-tile + tail mask, an all--inf
    #      channel (tie-break edge case), flip=False ----------------------
    B2, C2, H2, W2 = 2, 3, 10, 20                                       # HW = 200
    hm2 = jax.random.normal(k3, (B2, C2, H2, W2), dtype=jnp.float32)
    hm2 = hm2.at[:, 0].set(-jnp.inf)                                    # all--inf channel -> index 0
    ys2 = jnp.linspace(-1.0, 1.0, H2, dtype=jnp.float32)
    xs2 = jnp.linspace(-1.0, 1.0, W2, dtype=jnp.float32)
    yy2, xx2 = jnp.meshgrid(ys2, xs2, indexing="ij")
    base2 = jnp.stack([yy2, xx2], axis=0)
    off2 = jax.random.uniform(k4, (B2, 1, 1, 1), dtype=jnp.float32) * 0.1
    grid2 = base2[None, ...] + off2

    out2 = jax.block_until_ready(
        coordinate_decoding(grid2, hm2, flip=False, hw_tile=128))       # 2 HW tiles, masked tail
    ref2 = _reference(grid2, hm2, flip=False)
    assert out2.shape == (B2, C2, 2), out2.shape
    assert jnp.allclose(out2, ref2, atol=1e-6), (out2, ref2)

    print("KERNEL_OK")
</pallas_src>

<mosaic_0001>
module attributes {stable_mosaic.version = 11 : i64} {
  func.func @_argmax_kernel(%arg0: i32, %arg1: i32, %arg2: memref<2x4x256xf32, #tpu.memory_space<vmem>>, %arg3: memref<2x4x1xi32, #tpu.memory_space<vmem>>, %arg4: memref<2x4x1xf32, #tpu.memory_space<vmem>>, %arg5: memref<2x4x1xi32, #tpu.memory_space<vmem>>) attributes {dimension_semantics = [#tpu.dimension_semantics<parallel>, #tpu.dimension_semantics<arbitrary>], iteration_bounds = array<i64: 1, 1>, scalar_prefetch = 0 : i64, scratch_operands = 2 : i64, tpu.core_type = #tpu.core_type<tc>, window_params = [{transform_indices = @transform_0, window_bounds = array<i64: 2, 4, 256>}, {transform_indices = @transform_1, window_bounds = array<i64: 2, 4, 1>}]} {
    %c0 = arith.constant 0 : index
    %c0_0 = arith.constant 0 : index
    %c0_1 = arith.constant 0 : index
    %0 = vector.load %arg2[%c0, %c0_0, %c0_1] : memref<2x4x256xf32, #tpu.memory_space<vmem>>, vector<2x4x256xf32>
    %1 = tpu.iota {dimensions = array<i32: 2>} : vector<2x4x256xi32>
    %cst = arith.constant dense<0xFF800000> : vector<2x4xf32>
    %2 = vector.multi_reduction <maximumf>, %0, %cst [2] : vector<2x4x256xf32> to vector<2x4xf32>
    %3 = vector.shape_cast %2 : vector<2x4xf32> to vector<2x4x1xf32>
    %4 = vector.broadcast %3 : vector<2x4x1xf32> to vector<2x4x256xf32>
    %5 = arith.cmpf oeq, %0, %4 : vector<2x4x256xf32>
    %c256_i32 = arith.constant 256 : i32
    %6 = vector.broadcast %c256_i32 : i32 to vector<2x4x256xi32>
    %7 = arith.select %5, %1, %6 : vector<2x4x256xi1>, vector<2x4x256xi32>
    %cst_2 = arith.constant dense<2147483647> : vector<2x4xi32>
    %8 = vector.multi_reduction <minsi>, %7, %cst_2 [2] : vector<2x4x256xi32> to vector<2x4xi32>
    %9 = vector.shape_cast %8 : vector<2x4xi32> to vector<2x4x1xi32>
    %c0_i32 = arith.constant 0 : i32
    %10 = arith.cmpi eq, %arg1, %c0_i32 : i32
    %11 = arith.extui %10 : i1 to i32
    %c0_i32_3 = arith.constant 0 : i32
    %12 = arith.cmpi ne, %11, %c0_i32_3 : i32
    scf.if %12 {
      %c0_8 = arith.constant 0 : index
      %c0_9 = arith.constant 0 : index
      %c0_10 = arith.constant 0 : index
      %19 = vector.load %arg4[%c0_8, %c0_9, %c0_10] : memref<2x4x1xf32, #tpu.memory_space<vmem>>, vector<2x4x1xf32>
      tpu.vector_store %arg4[%c0_8, %c0_9, %c0_10], %3 {strides = array<i32>} : memref<2x4x1xf32, #tpu.memory_space<vmem>>, vector<2x4x1xf32>,
      %c0_11 = arith.constant 0 : index
      %c0_12 = arith.constant 0 : index
      %c0_13 = arith.constant 0 : index
      %20 = vector.load %arg5[%c0_11, %c0_12, %c0_13] : memref<2x4x1xi32, #tpu.memory_space<vmem>>, vector<2x4x1xi32>
      tpu.vector_store %arg5[%c0_11, %c0_12, %c0_13], %9 {strides = array<i32>} : memref<2x4x1xi32, #tpu.memory_space<vmem>>, vector<2x4x1xi32>,
    } else {
    }
    %c0_i32_4 = arith.constant 0 : i32
    %13 = arith.cmpi sgt, %arg1, %c0_i32_4 : i32
    %14 = arith.extui %13 : i1 to i32
    %c0_i32_5 = arith.constant 0 : i32
    %15 = arith.cmpi ne, %14, %c0_i32_5 : i32
    scf.if %15 {
      %c0_8 = arith.constant 0 : index
      %c0_9 = arith.constant 0 : index
      %c0_10 = arith.constant 0 : index
      %19 = vector.load %arg4[%c0_8, %c0_9, %c0_10] : memref<2x4x1xf32, #tpu.memory_space<vmem>>, vector<2x4x1xf32>
      %20 = arith.cmpf ogt, %3, %19 : vector<2x4x1xf32>
      %c0_11 = arith.constant 0 : index
      %c0_12 = arith.constant 0 : index
      %c0_13 = arith.constant 0 : index
      %21 = vector.load %arg4[%c0_11, %c0_12, %c0_13] : memref<2x4x1xf32, #tpu.memory_space<vmem>>, vector<2x4x1xf32>
      %22 = arith.select %20, %3, %21 : vector<2x4x1xi1>, vector<2x4x1xf32>
      %c0_14 = arith.constant 0 : index
      %c0_15 = arith.constant 0 : index
      %c0_16 = arith.constant 0 : index
      %23 = vector.load %arg4[%c0_14, %c0_15, %c0_16] : memref<2x4x1xf32, #tpu.memory_space<vmem>>, vector<2x4x1xf32>
      tpu.vector_store %arg4[%c0_14, %c0_15, %c0_16], %22 {strides = array<i32>} : memref<2x4x1xf32, #tpu.memory_space<vmem>>, vector<2x4x1xf32>,
      %c256_i32_17 = arith.constant 256 : i32
      %24 = arith.muli %arg1, %c256_i32_17 : i32
      %25 = vector.broadcast %24 : i32 to vector<2x4x1xi32>
      %26 = arith.addi %9, %25 : vector<2x4x1xi32>
      %c0_18 = arith.constant 0 : index
      %c0_19 = arith.constant 0 : index
      %c0_20 = arith.constant 0 : index
      %27 = vector.load %arg5[%c0_18, %c0_19, %c0_20] : memref<2x4x1xi32, #tpu.memory_space<vmem>>, vector<2x4x1xi32>
      %28 = arith.select %20, %26, %27 : vector<2x4x1xi1>, vector<2x4x1xi32>
      %c0_21 = arith.constant 0 : index
      %c0_22 = arith.constant 0 : index
      %c0_23 = arith.constant 0 : index
      %29 = vector.load %arg5[%c0_21, %c0_22, %c0_23] : memref<2x4x1xi32, #tpu.memory_space<vmem>>, vector<2x4x1xi32>
      tpu.vector_store %arg5[%c0_21, %c0_22, %c0_23], %28 {strides = array<i32>} : memref<2x4x1xi32, #tpu.memory_space<vmem>>, vector<2x4x1xi32>,
    } else {
    }
    %c0_i32_6 = arith.constant 0 : i32
    %16 = arith.cmpi eq, %arg1, %c0_i32_6 : i32
    %17 = arith.extui %16 : i1 to i32
    %c0_i32_7 = arith.constant 0 : i32
    %18 = arith.cmpi ne, %17, %c0_i32_7 : i32
    scf.if %18 {
      %c0_8 = arith.constant 0 : index
      %c0_9 = arith.constant 0 : index
      %c0_10 = arith.constant 0 : index
      %19 = vector.load %arg5[%c0_8, %c0_9, %c0_10] : memref<2x4x1xi32, #tpu.memory_space<vmem>>, vector<2x4x1xi32>
      %c0_11 = arith.constant 0 : index
      %c0_12 = arith.constant 0 : index
      %c0_13 = arith.constant 0 : index
      %20 = vector.load %arg3[%c0_11, %c0_12, %c0_13] : memref<2x4x1xi32, #tpu.memory_space<vmem>>, vector<2x4x1xi32>
      tpu.vector_store %arg3[%c0_11, %c0_12, %c0_13], %19 {strides = array<i32>} : memref<2x4x1xi32, #tpu.memory_space<vmem>>, vector<2x4x1xi32>,
    } else {
    }
    return
  }
  func.func @transform_0(%arg0: i32, %arg1: i32) -> (i32, i32, i32) {
    %c0_i32 = arith.constant 0 : i32
    %c0_i32_0 = arith.constant 0 : i32
    return %arg0, %c0_i32, %arg1 : i32, i32, i32
  }
  func.func @transform_1(%arg0: i32, %arg1: i32) -> (i32, i32, i32) {
    %c0_i32 = arith.constant 0 : i32
    %c0_i32_0 = arith.constant 0 : i32
    %c0_i32_1 = arith.constant 0 : i32
    return %arg0, %c0_i32, %c0_i32_0 : i32, i32, i32
  }
}

</mosaic_0001>

<bundles_post_ra>
// kernel: tpu_custom_call.1
= control target key start
LH: loop header
LB: loop body
LE: loop exit
PB: predicated region body
PF: predicated region fallthrough
CT: control target
= control target key end

     0   :  { %6 = vsyncpa [#allocation5], 0  ;;  %s180_s6 = smov [#allocation4]   ;;  %s224_s0 = inlined_call_operand.hbm [shape: f32[2,4,256], index: 0, kind: input, shape index: {}]   ;;  %s225_s1 = inlined_call_operand.vmem [shape: s32[2,4,1], index: 1, kind: output, shape index: {}]  }
   0x1   :  { %s12_s7 = sshll.u32 %s180_s6, 4  ;;  %s156_s10 = scalar_lea.hbm %s224_s0, 256  ;;  %s13_s7 = int_to_ptr.vmem [resolvable:$true] %s12_s7 }
   0x2   :  { %p157_p0 = scmp.ne.s32.totalorder %s224_s0, %s156_s10  ;;  %p160_p1 = scmp.lt.u32.totalorder %s156_s10, %s224_s0 }
   0x4   :  { %p162_p2 = pnand %p160_p1, %p157_p0 }
   0x6   :  { %165 = shalt.err (!%p162_p2)
}
   0x7   :  { %s166_s15 = scalar_lea.vmem %s13_s7, 256  ;;  %p171_p4 = scmp.lt.s32.totalorder %s13_s7, %s13_s7 }
   0x8   :  { %p167_p3 = scmp.ne.s32.totalorder %s13_s7, %s166_s15  ;;  %p172_p5 = scmp.lt.s32.totalorder %s166_s15, %s166_s15 }
   0xa   :  { %p173_p6 = por %p172_p5, %p171_p4 }
   0xc   :  { %p174_p7 = pnand %p173_p6, %p167_p3 }
   0xe   :  { %177 = shalt.err (!%p174_p7)
}
   0xf   :  { %s181_s16 = smov 128   ;;  %s182_s17 = smov 8  }
  0x10   :  { %18 = dma.hbm_to_vmem [thread:$0]  %s224_s0, 256, %s13_s7, [#allocation5], %s181_s16, %s181_s16, %s182_s17  }
  0x11   :  { %178 = dma.done.wait [#allocation5], 256  }
  0x12   :  { %179 = vsyncadd [#allocation5], 4294967040  ;;  %vm33_vm0 = vcmask 1043456   ;;  %v22_v0 = vld [vmem:[#allocation4] sm:$0xff]  ;;  %v23_v1 = vld [vmem:[#allocation4 + $0x8] sm:$0xff]  ;;  %v24_v10 = vlaneseq  ;;  %vm109_vm1 = vcmask 3072  }
  0x13   :  { %v29_v2 = vcombine.high %v22_v0, %v22_v0  ;;  %v34_v3 = vsel %vm33_vm0, %v22_v0, -inf  ;;  %v30_v4 = vcombine.high %v23_v1, %v23_v1  ;;  %v39_v6 = vsel %vm33_vm0, %v23_v1, -inf }
  0x14   :  { %v183_v11 = vmov 839922192   ;;  %v25_v13 = vand.u32 127, %v24_v10  ;;  %v50_v15 = vshrl.u32 %v24_v10, 7 }
  0x15   :  { %v35_v5 = vsel %vm33_vm0, %v29_v2, -inf  ;;  %v40_v7 = vsel %vm33_vm0, %v30_v4, -inf  ;;  %v47_v12 = vunpack.c.l.s4 %v183_v11 }
  0x16   :  { %v36_v8 = vmax.f32 %v34_v3, %v35_v5  ;;  %v41_v9 = vmax.f32 %v39_v6, %v40_v7  ;;  %v26_v16 = vadd.s32 128, %v25_v13 }
  0x17   :  { %v48_v14 = vunpack.c.0.s8 %v47_v12 }
  0x18   :  { %37 = vmax.xlane.f32.xlu0 %v36_v8  ;;  %v64_v18 = vcombine.low %v25_v13, %v26_v16 }
  0x19   :  { %v51_v17 = vsub.s32 %v48_v14, %v50_v15 }
  0x1c   :  { %42 = vmax.xlane.f32.xlu0 %v41_v9 }
  0xa5   :  { %v38_v19 = vpop.xlane.xlu0 %37 }
  0xa6   :  { %v52_v20 = vrot.slane %v38_v19, %v51_v17 }
  0xa8   :  { %vm62_vm2 = vcmp.eq.f32.partialorder %v22_v0, %v52_v20 }
  0xa9   :  { %v65_v21 = vsel %vm62_vm2, %v64_v18, 256  ;;  %v43_v22 = vpop.xlane.xlu0 %42 }
  0xaa   :  { %v67_v23 = vcombine.high %v65_v21, %v65_v21  ;;  %v59_v24 = vrot.slane %v43_v22, %v51_v17  ;;  %v69_v25 = vsel %vm33_vm0, %v65_v21, 2147483647 }
  0xac   :  { %vm63_vm3 = vcmp.eq.f32.partialorder %v23_v1, %v59_v24  ;;  %v70_v26 = vsel %vm33_vm0, %v67_v23, 2147483647 }
  0xad   :  { %v66_v27 = vsel %vm63_vm3, %v64_v18, 256  ;;  %vm71_vm4 = vcmp.lt.s32.totalorder %v69_v25, %v70_v26 }
  0xae   :  { %v68_v28 = vcombine.high %v66_v27, %v66_v27  ;;  %v72_v29 = vsel %vm71_vm4, %v69_v25, %v70_v26  ;;  %v87_v31 = vsel %vm33_vm0, %v66_v27, 2147483647 }
  0xaf   :  { %v74_v30 = vshra.s32 %v72_v29, 16  ;;  %v73_v37 = vand.u32 65535, %v72_v29 }
  0xb0   :  { %v88_v32 = vsel %vm33_vm0, %v68_v28, 2147483647 }
  0xb1   :  { %v76_v33 = vcvt.s32.f32 %v74_v30  ;;  %vm89_vm5 = vcmp.lt.s32.totalorder %v87_v31, %v88_v32  ;;  %v75_v39 = vcvt.s32.f32 %v73_v37 }
  0xb2   :  { %v90_v34 = vsel %vm89_vm5, %v87_v31, %v88_v32 }
  0xb3   :  { %77 = vmin.xlane.f32.xlu1 %v76_v33  ;;  %v92_v35 = vshra.s32 %v90_v34, 16  ;;  %v91_v40 = vand.u32 65535, %v90_v34 }
  0xb5   :  { %v94_v36 = vcvt.s32.f32 %v92_v35  ;;  %v93_v43 = vcvt.s32.f32 %v91_v40 }
  0xb7   :  { %95 = vmin.xlane.f32.xlu1 %v94_v36 }
 0x140   :  { %v78_v38 = vpop.xlane.xlu1 %77 }
 0x141   :  { %vm79_vm6 = vcmp.eq.f32.partialorder %v76_v33, %v78_v38  ;;  %v84_v45 = vcvt.f32.s32 %v78_v38 }
 0x142   :  { %v80_v41 = vsel %vm79_vm6, %v75_v39, inf }
 0x143   :  { %81 = vmin.xlane.f32.xlu0 %v80_v41  ;;  %v85_v47 = vshll.u32 %v84_v45, 16 }
 0x144   :  { %v96_v42 = vpop.xlane.xlu1 %95 }
 0x145   :  { %vm97_vm7 = vcmp.eq.f32.partialorder %v94_v36, %v96_v42  ;;  %v102_v48 = vcvt.f32.s32 %v96_v42 }
 0x146   :  { %v98_v44 = vsel %vm97_vm7, %v93_v43, inf }
 0x147   :  { %99 = vmin.xlane.f32.xlu1 %v98_v44  ;;  %v103_v52 = vshll.u32 %v102_v48, 16 }
 0x1d0   :  { %v82_v46 = vpop.xlane.xlu0 %81 }
 0x1d1   :  { %v83_v49 = vcvt.f32.s32 %v82_v46 }
 0x1d3   :  { %v86_v50 = vadd.s32 %v85_v47, %v83_v49 }
 0x1d4   :  { %v100_v51 = vpop.xlane.xlu1 %99 }
 0x1d5   :  { %112 = vst.msk [vmem:[#allocation3] sm:$0xf] %vm109_vm1, %v86_v50  ;;  %v101_v53 = vcvt.f32.s32 %v100_v51 }
 0x1d7   :  { %v104_v54 = vadd.s32 %v103_v52, %v101_v53 }
 0x1d9   :  { %113 = vst.msk [vmem:[#allocation3 + $0x4] sm:$0xf] %vm109_vm1, %v104_v54 }
 0x1dc   :  { %v140_v55 = vld [vmem:[#allocation3] sm:$0xf] }
 0x1dd   :  { %143 = vst.msk [vmem:[%s225_s1] sm:$0xf] %vm109_vm1, %v140_v55 }
 0x1e0   :  { %v141_v56 = vld [vmem:[#allocation3 + $0x4] sm:$0xf] }
 0x1e1   :  { %144 = vst.msk [vmem:[%s225_s1 + $0x4] sm:$0xf] %vm109_vm1, %v141_v56 }
 0x1e2   :  { %149 = vsyncpa [#allocation5], 1 }

</bundles_post_ra>
